<compile_context>
chip_gen: v7x
topology: tpu7x:2x2x1
jax: 0.10.0
libtpu: 0.0.40
codegen_flags: <defaults>
</compile_context>

<pallas_src>
import functools

import jax
import jax.numpy as jnp
from jax.experimental import pallas as pl
from jax.experimental.pallas import tpu as pltpu


def _round_up(x, m):
    return (x + m - 1) // m * m


# ----------------------------------------------------------------------------
# Fused kernel: all TemporalBlocks + final Linear in one invocation
# ----------------------------------------------------------------------------
def _fused_tcn_kernel(x_ref, w_ref, b_ref, out_ref, *, cfg, fcl_cfg, K):
    Bt, T, C0 = x_ref.shape
    N = Bt * T

    # Per-row time index (0..T-1 within each batch element). Used to zero the
    # rows that a causal shift would pull from the previous batch element /
    # the circular wrap-around of the roll.
    t_idx = jax.lax.broadcasted_iota(jnp.int32, (Bt, T, 1), 1).reshape(N, 1)

    mask_cache = {}

    def shift_mask(shift):
        m = mask_cache.get(shift)
        if m is None:
            m = t_idx >= shift
            mask_cache[shift] = m
        return m

    def mm(a_f32, w_bf16):
        # MXU matmul: bf16 operands, f32 accumulation.
        return jnp.dot(a_f32.astype(jnp.bfloat16), w_bf16,
                       preferred_element_type=jnp.float32)

    def conv_all(x2d, w_off, b_row, cin, cout, dilation):
        """Dilated causal conv over every timestep: K accumulated matmuls."""
        acc = None
        for k in range(K):
            shift = (K - 1 - k) * dilation
            if shift >= T:          # tap entirely before t=0 -> contributes 0
                continue
            if shift == 0:
                tap = x2d
            else:
                # out[t] += x[t - shift]: sublane roll (XLU) + causal mask.
                tap = jnp.where(shift_mask(shift),
                                pltpu.roll(x2d, shift, axis=0), 0.0)
            wk = w_ref[w_off + k * cin:w_off + (k + 1) * cin, :cout]
            part = mm(tap, wk)
            acc = part if acc is None else acc + part
        return acc + b_ref[b_row:b_row + 1, :cout]

    def conv_last_row(h2d, w_off, b_row, cin, cout, dilation):
        """Same conv, but only the final timestep of each batch element."""
        h3d = h2d.reshape(Bt, T, cin)
        acc = None
        for k in range(K):
            shift = (K - 1 - k) * dilation
            src_t = T - 1 - shift
            if src_t < 0:
                continue
            wk = w_ref[w_off + k * cin:w_off + (k + 1) * cin, :cout]
            part = mm(h3d[:, src_t, :], wk)
            acc = part if acc is None else acc + part
        return acc + b_ref[b_row:b_row + 1, :cout]

    # Running activation (B*T, channels) in f32; matmuls run in bf16.
    act = x_ref[...].astype(jnp.float32).reshape(N, C0)

    n_blocks = len(cfg)
    for li, c in enumerate(cfg):
        d, cin, cout = c["dilation"], c["cin"], c["cout"]
        is_last = li == n_blocks - 1

        # conv1 + bias + relu   (dropout = identity at inference)
        h1 = jnp.maximum(
            conv_all(act, c["w1_off"], c["b1_row"], cin, cout, d), 0.0)

        if not is_last:
            h2 = jnp.maximum(
                conv_all(h1, c["w2_off"], c["b2_row"], cout, cout, d), 0.0)
            if c["use_ds"]:
                wd = w_ref[c["wd_off"]:c["wd_off"] + cin, :cout]
                res = mm(act, wd) + b_ref[c["bd_row"]:c["bd_row"] + 1, :cout]
            else:
                res = act                      # identity: cin == cout
            act = jnp.maximum(h2 + res, 0.0)
        else:
            # Only the final timestep feeds the FC head: compute just that row.
            h2_last = jnp.maximum(
                conv_last_row(h1, c["w2_off"], c["b2_row"], cout, cout, d),
                0.0)
            x_last = act.reshape(Bt, T, cin)[:, T - 1, :]       # (Bt, cin)
            if c["use_ds"]:
                wd = w_ref[c["wd_off"]:c["wd_off"] + cin, :cout]
                res = (mm(x_last, wd)
                       + b_ref[c["bd_row"]:c["bd_row"] + 1, :cout])
            else:
                res = x_last
            y = jnp.maximum(h2_last + res, 0.0)                 # (Bt, c_last)
            fw = w_ref[fcl_cfg["w_off"]:fcl_cfg["w_off"] + cout, :]
            fb = b_ref[fcl_cfg["b_row"]:fcl_cfg["b_row"] + 1, :]
            # Lane-dense padded write; host slices back to label_dim.
            out_ref[...] = (mm(y, fw) + fb).astype(out_ref.dtype)


# ----------------------------------------------------------------------------
# Parameter packing: one bf16 weight slab + one f32 bias slab + static offsets
# ----------------------------------------------------------------------------
def pack_params(params, input_channels):
    blocks = params["blocks"]
    K = int(blocks[0]["w1"].shape[0])
    label_dim = int(params["fcl_w"].shape[1])
    widths = [int(b["w1"].shape[2]) for b in blocks] + [label_dim, 128]
    lpad = _round_up(max(widths), 128)            # lane-dense slab / output

    w_parts, b_parts, cfg = [], [], []
    wr = br = 0

    def add_w(mat2d):
        nonlocal wr
        off = wr
        w_parts.append(jnp.pad(mat2d, ((0, 0), (0, lpad - mat2d.shape[1]))))
        wr += mat2d.shape[0]
        return off

    def add_b(vec):
        nonlocal br
        row = br
        b_parts.append(jnp.pad(vec.reshape(1, -1),
                               ((0, 0), (0, lpad - vec.shape[0]))))
        br += 1
        return row

    for blk in blocks:
        Kb, cin, cout = blk["w1"].shape
        c = {"dilation": int(blk["dilation"]), "cin": int(cin),
             "cout": int(cout), "use_ds": bool(blk["use_downsample"])}
        # (K, cin, cout) -> taps stacked along rows: rows [k*cin, (k+1)*cin)
        c["w1_off"] = add_w(blk["w1"].reshape(Kb * cin, cout))
        c["b1_row"] = add_b(blk["b1"])
        c["w2_off"] = add_w(blk["w2"].reshape(Kb * cout, cout))
        c["b2_row"] = add_b(blk["b2"])
        if c["use_ds"]:
            c["wd_off"] = add_w(blk["wd"])
            c["bd_row"] = add_b(blk["bd"])
        cfg.append(c)

    fcl_cfg = {"w_off": add_w(params["fcl_w"]),
               "b_row": add_b(params["fcl_b"])}

    w_slab = jnp.concatenate(w_parts, axis=0).astype(jnp.bfloat16)
    b_slab = jnp.concatenate(b_parts, axis=0).astype(jnp.float32)
    w_slab = jnp.pad(w_slab, ((0, (-w_slab.shape[0]) % 8), (0, 0)))
    b_slab = jnp.pad(b_slab, ((0, (-b_slab.shape[0]) % 8), (0, 0)))

    return {"w_slab": w_slab, "b_slab": b_slab, "cfg": tuple(cfg),
            "fcl_cfg": fcl_cfg, "K": K, "C0": int(input_channels),
            "label_dim": label_dim, "lpad": lpad,
            "c_last": int(blocks[-1]["w1"].shape[2])}


# ----------------------------------------------------------------------------
# Wrapper: single fused pallas_call over a batch-tiled "parallel" grid
# ----------------------------------------------------------------------------
def label_mapping_traj_part_forward(packed, traj, mask=None, batch_tile=None):
    """traj: (B, T, C_traj)  mask: (B, T) or None  ->  (B, label_dim)."""
    x = traj
    if mask is not None:
        # torch: permute to NCW then concat mask on the channel axis; in the
        # channels-last layout that is a concat on the last axis.
        x = jnp.concatenate([x, mask[:, :, None].astype(x.dtype)], axis=-1)
    x = x.astype(jnp.float32)
    B, T, C0 = x.shape
    assert C0 == packed["C0"], (C0, packed["C0"])

    lpad = packed["lpad"]
    label_dim = packed["label_dim"]

    if batch_tile is None:
        # Tile the batch only when it pays for itself; tiles must keep the
        # output sublane dim a multiple of 8 (layout rule).
        if B % 8 == 0 and B * T >= 8192:
            batch_tile = 8
            while B % (batch_tile * 2) == 0 and batch_tile * T < 2048:
                batch_tile *= 2
        else:
            batch_tile = B
    assert B % batch_tile == 0
    assert batch_tile == B or batch_tile % 8 == 0

    kernel = functools.partial(_fused_tcn_kernel, cfg=packed["cfg"],
                               fcl_cfg=packed["fcl_cfg"], K=packed["K"])

    # Advisory cost estimate so XLA schedules neighbouring ops sensibly.
    flops = 0
    for c in packed["cfg"]:
        flops += 2 * B * T * packed["K"] * (c["cin"] + c["cout"]) * c["cout"]
        if c["use_ds"]:
            flops += 2 * B * T * c["cin"] * c["cout"]
    flops += 2 * B * packed["c_last"] * label_dim
    bytes_accessed = (x.size * x.dtype.itemsize
                      + packed["w_slab"].size * 2
                      + packed["b_slab"].size * 4
                      + B * lpad * 4)

    out_padded = pl.pallas_call(
        kernel,
        out_shape=jax.ShapeDtypeStruct((B, lpad), jnp.float32),
        grid=(B // batch_tile,),
        in_specs=[
            pl.BlockSpec((batch_tile, T, C0), lambda i: (i, 0, 0)),
            pl.BlockSpec(packed["w_slab"].shape, lambda i: (0, 0)),
            pl.BlockSpec(packed["b_slab"].shape, lambda i: (0, 0)),
        ],
        out_specs=pl.BlockSpec((batch_tile, lpad), lambda i: (i, 0)),
        compiler_params=pltpu.CompilerParams(
            dimension_semantics=("parallel",),
            vmem_limit_bytes=48 * 1024 * 1024),
        cost_estimate=pl.CostEstimate(flops=int(flops), transcendentals=0,
                                      bytes_accessed=int(bytes_accessed)),
    )(x, packed["w_slab"], packed["b_slab"])

    return out_padded[:, :label_dim]


# ----------------------------------------------------------------------------
# Parameter init (deterministic, synthetic, PyTorch-like fan-in scaling)
# ----------------------------------------------------------------------------
def init_params(key, input_channels, num_channels, label_dim, kernel_size):
    params = {"blocks": []}
    for i, out_ch in enumerate(num_channels):
        in_ch = input_channels if i == 0 else num_channels[i - 1]
        key, k1, k2, k3, k4, k5, k6 = jax.random.split(key, 7)
        s1 = (kernel_size * in_ch) ** -0.5
        s2 = (kernel_size * out_ch) ** -0.5
        blk = {
            "w1": s1 * jax.random.normal(k1, (kernel_size, in_ch, out_ch),
                                         jnp.float32),
            "b1": 0.1 * jax.random.normal(k2, (out_ch,), jnp.float32),
            "w2": s2 * jax.random.normal(k3, (kernel_size, out_ch, out_ch),
                                         jnp.float32),
            "b2": 0.1 * jax.random.normal(k4, (out_ch,), jnp.float32),
            "dilation": 2 ** i,
            "use_downsample": in_ch != out_ch,
        }
        if blk["use_downsample"]:
            blk["wd"] = (in_ch ** -0.5) * jax.random.normal(
                k5, (in_ch, out_ch), jnp.float32)
            blk["bd"] = 0.1 * jax.random.normal(k6, (out_ch,), jnp.float32)
        params["blocks"].append(blk)
    key, kf, kfb = jax.random.split(key, 3)
    c_last = num_channels[-1]
    params["fcl_w"] = (c_last ** -0.5) * jax.random.normal(
        kf, (c_last, label_dim), jnp.float32)
    params["fcl_b"] = 0.1 * jax.random.normal(kfb, (label_dim,), jnp.float32)
    return params


# ----------------------------------------------------------------------------
# Pure-JAX reference (correctness check).  matmul_dtype=bfloat16 mirrors the
# kernel's MXU operand precision (the kernel intentionally uses bf16 operands
# with f32 accumulation); structure / causality / bias / residual / last-step
# semantics are checked exactly.
# ----------------------------------------------------------------------------
def _ref_forward(params, traj, mask=None, matmul_dtype=jnp.bfloat16):
    x = traj
    if mask is not None:
        x = jnp.concatenate([x, mask[:, :, None].astype(x.dtype)], axis=-1)
    x = x.astype(jnp.float32)

    def mm3(a, w):
        return jnp.einsum("btc,cd->btd", a.astype(matmul_dtype),
                          w.astype(matmul_dtype),
                          preferred_element_type=jnp.float32)

    def conv(inp, w, b, d):
        Kk = w.shape[0]
        pad = (Kk - 1) * d
        T = inp.shape[1]
        ipad = jnp.pad(inp, ((0, 0), (pad, 0), (0, 0)))
        out = jnp.zeros(inp.shape[:2] + (w.shape[2],), jnp.float32)
        for k in range(Kk):
            out = out + mm3(ipad[:, k * d:k * d + T, :], w[k])
        return out + b

    for blk in params["blocks"]:
        d = blk["dilation"]
        h1 = jax.nn.relu(conv(x, blk["w1"], blk["b1"], d))
        h2 = jax.nn.relu(conv(h1, blk["w2"], blk["b2"], d))
        if blk["use_downsample"]:
            res = mm3(x, blk["wd"]) + blk["bd"]
        else:
            res = x
        x = jax.nn.relu(h2 + res)
    y = x[:, -1, :]
    return (jnp.dot(y.astype(matmul_dtype),
                    params["fcl_w"].astype(matmul_dtype),
                    preferred_element_type=jnp.float32) + params["fcl_b"])


if __name__ == "__main__":
    key = jax.random.PRNGKey(0)
    B, T = 2, 16
    traj_channels = 3
    input_channels = traj_channels + 1          # +1 for the concatenated mask
    num_channels = [8, 8, 16]                   # exercises both residual paths
    label_dim = 32
    kernel_size = 3

    kp, kt, km = jax.random.split(key, 3)
    params = init_params(kp, input_channels, num_channels, label_dim,
                         kernel_size)
    traj = jax.random.normal(kt, (B, T, traj_channels), jnp.float32)
    mask = (jax.random.uniform(km, (B, T)) > 0.3).astype(jnp.float32)

    packed = pack_params(params, input_channels)
    out = label_mapping_traj_part_forward(packed, traj, mask)
    out = jax.block_until_ready(out)

    ref = _ref_forward(params, traj, mask)
    assert out.shape == (B, label_dim), out.shape
    assert jnp.allclose(out, ref, atol=2e-3, rtol=2e-3), float(
        jnp.max(jnp.abs(out - ref)))

    print("KERNEL_OK")
</pallas_src>

<mosaic_0001>
module attributes {stable_mosaic.version = 11 : i64} {
  func.func @_fused_tcn_kernel(%arg0: i32, %arg1: memref<2x16x4xf32, #tpu.memory_space<vmem>>, %arg2: memref<184x128xbf16, #tpu.memory_space<vmem>>, %arg3: memref<16x128xf32, #tpu.memory_space<vmem>>, %arg4: memref<2x128xf32, #tpu.memory_space<vmem>>) attributes {dimension_semantics = [#tpu.dimension_semantics<parallel>], iteration_bounds = array<i64: 1>, scalar_prefetch = 0 : i64, scratch_operands = 0 : i64, tpu.core_type = #tpu.core_type<tc>, window_params = [{transform_indices = @transform_0, window_bounds = array<i64: 2, 16, 4>}, {pipeline_mode = #tpu.pipeline_mode<synchronous>, transform_indices = @transform_1, window_bounds = array<i64: 184, 128>}, {pipeline_mode = #tpu.pipeline_mode<synchronous>, transform_indices = @transform_2, window_bounds = array<i64: 16, 128>}, {transform_indices = @transform_3, window_bounds = array<i64: 2, 128>}]} {
    %0 = tpu.iota {dimensions = array<i32: 1>} : vector<2x16x1xi32>
    %1 = vector.shape_cast %0 : vector<2x16x1xi32> to vector<32x1xi32>
    %c0 = arith.constant 0 : index
    %c0_0 = arith.constant 0 : index
    %c0_1 = arith.constant 0 : index
    %2 = vector.load %arg1[%c0, %c0_0, %c0_1] : memref<2x16x4xf32, #tpu.memory_space<vmem>>, vector<2x16x4xf32>
    %3 = vector.shape_cast %2 : vector<2x16x4xf32> to vector<32x4xf32>
    %c2_i32 = arith.constant 2 : i32
    %4 = vector.broadcast %c2_i32 : i32 to vector<32x1xi32>
    %5 = arith.cmpi sge, %1, %4 : vector<32x1xi32>
    %c2_i32_2 = arith.constant 2 : i32
    %6 = tpu.dynamic_rotate %3 by %c2_i32_2 dim 0 : vector<32x4xf32>, i32 -> vector<32x4xf32>
    %cst = arith.constant 0.000000e+00 : f32
    %7 = vector.shape_cast %5 : vector<32x1xi1> to vector<32x1xi1>
    %8 = vector.broadcast %7 : vector<32x1xi1> to vector<32x4xi1>
    %9 = vector.broadcast %cst : f32 to vector<32x4xf32>
    %10 = arith.select %8, %6, %9 : vector<32x4xi1>, vector<32x4xf32>
    %c0_3 = arith.constant 0 : index
    %c0_4 = arith.constant 0 : index
    %11 = vector.load %arg2[%c0_3, %c0_4] : memref<184x128xbf16, #tpu.memory_space<vmem>>, vector<4x8xbf16>
    %12 = arith.truncf %10 : vector<32x4xf32> to vector<32x4xbf16>
    %cst_5 = arith.constant dense<0.000000e+00> : vector<32x8xf32>
    %13 = tpu.matmul %12, %11, %cst_5 {dimension_numbers = #tpu.dot_dimension_numbers<[1], [0], [0], [1], [0, 0, 1, 1], [], []>} : vector<32x4xbf16>, vector<4x8xbf16>, vector<32x8xf32> -> vector<32x8xf32>
    %c1_i32 = arith.constant 1 : i32
    %14 = vector.broadcast %c1_i32 : i32 to vector<32x1xi32>
    %15 = arith.cmpi sge, %1, %14 : vector<32x1xi32>
    %c1_i32_6 = arith.constant 1 : i32
    %16 = tpu.dynamic_rotate %3 by %c1_i32_6 dim 0 : vector<32x4xf32>, i32 -> vector<32x4xf32>
    %cst_7 = arith.constant 0.000000e+00 : f32
    %17 = vector.shape_cast %15 : vector<32x1xi1> to vector<32x1xi1>
    %18 = vector.broadcast %17 : vector<32x1xi1> to vector<32x4xi1>
    %19 = vector.broadcast %cst_7 : f32 to vector<32x4xf32>
    %20 = arith.select %18, %16, %19 : vector<32x4xi1>, vector<32x4xf32>
    %c4 = arith.constant 4 : index
    %c0_8 = arith.constant 0 : index
    %21 = vector.load %arg2[%c4, %c0_8] : memref<184x128xbf16, #tpu.memory_space<vmem>>, vector<4x8xbf16>
    %22 = arith.truncf %20 : vector<32x4xf32> to vector<32x4xbf16>
    %cst_9 = arith.constant dense<0.000000e+00> : vector<32x8xf32>
    %23 = tpu.matmul %22, %21, %cst_9 {dimension_numbers = #tpu.dot_dimension_numbers<[1], [0], [0], [1], [0, 0, 1, 1], [], []>} : vector<32x4xbf16>, vector<4x8xbf16>, vector<32x8xf32> -> vector<32x8xf32>
    %24 = arith.addf %13, %23 : vector<32x8xf32>
    %c8 = arith.constant 8 : index
    %c0_10 = arith.constant 0 : index
    %25 = vector.load %arg2[%c8, %c0_10] : memref<184x128xbf16, #tpu.memory_space<vmem>>, vector<4x8xbf16>
    %26 = arith.truncf %3 : vector<32x4xf32> to vector<32x4xbf16>
    %cst_11 = arith.constant dense<0.000000e+00> : vector<32x8xf32>
    %27 = tpu.matmul %26, %25, %cst_11 {dimension_numbers = #tpu.dot_dimension_numbers<[1], [0], [0], [1], [0, 0, 1, 1], [], []>} : vector<32x4xbf16>, vector<4x8xbf16>, vector<32x8xf32> -> vector<32x8xf32>
    %28 = arith.addf %24, %27 : vector<32x8xf32>
    %c0_12 = arith.constant 0 : index
    %c0_13 = arith.constant 0 : index
    %29 = vector.load %arg3[%c0_12, %c0_13] : memref<16x128xf32, #tpu.memory_space<vmem>>, vector<1x8xf32>
    %30 = vector.broadcast %29 : vector<1x8xf32> to vector<32x8xf32>
    %31 = arith.addf %28, %30 : vector<32x8xf32>
    %cst_14 = arith.constant 0.000000e+00 : f32
    %32 = vector.broadcast %cst_14 : f32 to vector<32x8xf32>
    %33 = arith.maximumf %31, %32 : vector<32x8xf32>
    %c2_i32_15 = arith.constant 2 : i32
    %34 = tpu.dynamic_rotate %33 by %c2_i32_15 dim 0 : vector<32x8xf32>, i32 -> vector<32x8xf32>
    %cst_16 = arith.constant 0.000000e+00 : f32
    %35 = vector.shape_cast %5 : vector<32x1xi1> to vector<32x1xi1>
    %36 = vector.broadcast %35 : vector<32x1xi1> to vector<32x8xi1>
    %37 = vector.broadcast %cst_16 : f32 to vector<32x8xf32>
    %38 = arith.select %36, %34, %37 : vector<32x8xi1>, vector<32x8xf32>
    %c12 = arith.constant 12 : index
    %c0_17 = arith.constant 0 : index
    %39 = vector.load %arg2[%c12, %c0_17] : memref<184x128xbf16, #tpu.memory_space<vmem>>, vector<8x8xbf16>
    %40 = arith.truncf %38 : vector<32x8xf32> to vector<32x8xbf16>
    %cst_18 = arith.constant dense<0.000000e+00> : vector<32x8xf32>
    %41 = tpu.matmul %40, %39, %cst_18 {dimension_numbers = #tpu.dot_dimension_numbers<[1], [0], [0], [1], [0, 0, 1, 1], [], []>} : vector<32x8xbf16>, vector<8x8xbf16>, vector<32x8xf32> -> vector<32x8xf32>
    %c1_i32_19 = arith.constant 1 : i32
    %42 = tpu.dynamic_rotate %33 by %c1_i32_19 dim 0 : vector<32x8xf32>, i32 -> vector<32x8xf32>
    %cst_20 = arith.constant 0.000000e+00 : f32
    %43 = vector.shape_cast %15 : vector<32x1xi1> to vector<32x1xi1>
    %44 = vector.broadcast %43 : vector<32x1xi1> to vector<32x8xi1>
    %45 = vector.broadcast %cst_20 : f32 to vector<32x8xf32>
    %46 = arith.select %44, %42, %45 : vector<32x8xi1>, vector<32x8xf32>
    %c20 = arith.constant 20 : index
    %c0_21 = arith.constant 0 : index
    %47 = vector.load %arg2[%c20, %c0_21] : memref<184x128xbf16, #tpu.memory_space<vmem>>, vector<8x8xbf16>
    %48 = arith.truncf %46 : vector<32x8xf32> to vector<32x8xbf16>
    %cst_22 = arith.constant dense<0.000000e+00> : vector<32x8xf32>
    %49 = tpu.matmul %48, %47, %cst_22 {dimension_numbers = #tpu.dot_dimension_numbers<[1], [0], [0], [1], [0, 0, 1, 1], [], []>} : vector<32x8xbf16>, vector<8x8xbf16>, vector<32x8xf32> -> vector<32x8xf32>
    %50 = arith.addf %41, %49 : vector<32x8xf32>
    %c28 = arith.constant 28 : index
    %c0_23 = arith.constant 0 : index
    %51 = vector.load %arg2[%c28, %c0_23] : memref<184x128xbf16, #tpu.memory_space<vmem>>, vector<8x8xbf16>
    %52 = arith.truncf %33 : vector<32x8xf32> to vector<32x8xbf16>
    %cst_24 = arith.constant dense<0.000000e+00> : vector<32x8xf32>
    %53 = tpu.matmul %52, %51, %cst_24 {dimension_numbers = #tpu.dot_dimension_numbers<[1], [0], [0], [1], [0, 0, 1, 1], [], []>} : vector<32x8xbf16>, vector<8x8xbf16>, vector<32x8xf32> -> vector<32x8xf32>
    %54 = arith.addf %50, %53 : vector<32x8xf32>
    %c1 = arith.constant 1 : index
    %c0_25 = arith.constant 0 : index
    %55 = vector.load %arg3[%c1, %c0_25] : memref<16x128xf32, #tpu.memory_space<vmem>>, vector<1x8xf32>
    %56 = vector.broadcast %55 : vector<1x8xf32> to vector<32x8xf32>
    %57 = arith.addf %54, %56 : vector<32x8xf32>
    %cst_26 = arith.constant 0.000000e+00 : f32
    %58 = vector.broadcast %cst_26 : f32 to vector<32x8xf32>
    %59 = arith.maximumf %57, %58 : vector<32x8xf32>
    %c36 = arith.constant 36 : index
    %c0_27 = arith.constant 0 : index
    %60 = vector.load %arg2[%c36, %c0_27] : memref<184x128xbf16, #tpu.memory_space<vmem>>, vector<4x8xbf16>
    %61 = arith.truncf %3 : vector<32x4xf32> to vector<32x4xbf16>
    %cst_28 = arith.constant dense<0.000000e+00> : vector<32x8xf32>
    %62 = tpu.matmul %61, %60, %cst_28 {dimension_numbers = #tpu.dot_dimension_numbers<[1], [0], [0], [1], [0, 0, 1, 1], [], []>} : vector<32x4xbf16>, vector<4x8xbf16>, vector<32x8xf32> -> vector<32x8xf32>
    %c2 = arith.constant 2 : index
    %c0_29 = arith.constant 0 : index
    %63 = vector.load %arg3[%c2, %c0_29] : memref<16x128xf32, #tpu.memory_space<vmem>>, vector<1x8xf32>
    %64 = vector.broadcast %63 : vector<1x8xf32> to vector<32x8xf32>
    %65 = arith.addf %62, %64 : vector<32x8xf32>
    %66 = arith.addf %59, %65 : vector<32x8xf32>
    %cst_30 = arith.constant 0.000000e+00 : f32
    %67 = vector.broadcast %cst_30 : f32 to vector<32x8xf32>
    %68 = arith.maximumf %66, %67 : vector<32x8xf32>
    %c4_i32 = arith.constant 4 : i32
    %69 = vector.broadcast %c4_i32 : i32 to vector<32x1xi32>
    %70 = arith.cmpi sge, %1, %69 : vector<32x1xi32>
    %c4_i32_31 = arith.constant 4 : i32
    %71 = tpu.dynamic_rotate %68 by %c4_i32_31 dim 0 : vector<32x8xf32>, i32 -> vector<32x8xf32>
    %cst_32 = arith.constant 0.000000e+00 : f32
    %72 = vector.shape_cast %70 : vector<32x1xi1> to vector<32x1xi1>
    %73 = vector.broadcast %72 : vector<32x1xi1> to vector<32x8xi1>
    %74 = vector.broadcast %cst_32 : f32 to vector<32x8xf32>
    %75 = arith.select %73, %71, %74 : vector<32x8xi1>, vector<32x8xf32>
    %c40 = arith.constant 40 : index
    %c0_33 = arith.constant 0 : index
    %76 = vector.load %arg2[%c40, %c0_33] : memref<184x128xbf16, #tpu.memory_space<vmem>>, vector<8x8xbf16>
    %77 = arith.truncf %75 : vector<32x8xf32> to vector<32x8xbf16>
    %cst_34 = arith.constant dense<0.000000e+00> : vector<32x8xf32>
    %78 = tpu.matmul %77, %76, %cst_34 {dimension_numbers = #tpu.dot_dimension_numbers<[1], [0], [0], [1], [0, 0, 1, 1], [], []>} : vector<32x8xbf16>, vector<8x8xbf16>, vector<32x8xf32> -> vector<32x8xf32>
    %c2_i32_35 = arith.constant 2 : i32
    %79 = tpu.dynamic_rotate %68 by %c2_i32_35 dim 0 : vector<32x8xf32>, i32 -> vector<32x8xf32>
    %cst_36 = arith.constant 0.000000e+00 : f32
    %80 = vector.shape_cast %5 : vector<32x1xi1> to vector<32x1xi1>
    %81 = vector.broadcast %80 : vector<32x1xi1> to vector<32x8xi1>
    %82 = vector.broadcast %cst_36 : f32 to vector<32x8xf32>
    %83 = arith.select %81, %79, %82 : vector<32x8xi1>, vector<32x8xf32>
    %c48 = arith.constant 48 : index
    %c0_37 = arith.constant 0 : index
    %84 = vector.load %arg2[%c48, %c0_37] : memref<184x128xbf16, #tpu.memory_space<vmem>>, vector<8x8xbf16>
    %85 = arith.truncf %83 : vector<32x8xf32> to vector<32x8xbf16>
    %cst_38 = arith.constant dense<0.000000e+00> : vector<32x8xf32>
    %86 = tpu.matmul %85, %84, %cst_38 {dimension_numbers = #tpu.dot_dimension_numbers<[1], [0], [0], [1], [0, 0, 1, 1], [], []>} : vector<32x8xbf16>, vector<8x8xbf16>, vector<32x8xf32> -> vector<32x8xf32>
    %87 = arith.addf %78, %86 : vector<32x8xf32>
    %c56 = arith.constant 56 : index
    %c0_39 = arith.constant 0 : index
    %88 = vector.load %arg2[%c56, %c0_39] : memref<184x128xbf16, #tpu.memory_space<vmem>>, vector<8x8xbf16>
    %89 = arith.truncf %68 : vector<32x8xf32> to vector<32x8xbf16>
    %cst_40 = arith.constant dense<0.000000e+00> : vector<32x8xf32>
    %90 = tpu.matmul %89, %88, %cst_40 {dimension_numbers = #tpu.dot_dimension_numbers<[1], [0], [0], [1], [0, 0, 1, 1], [], []>} : vector<32x8xbf16>, vector<8x8xbf16>, vector<32x8xf32> -> vector<32x8xf32>
    %91 = arith.addf %87, %90 : vector<32x8xf32>
    %c3 = arith.constant 3 : index
    %c0_41 = arith.constant 0 : index
    %92 = vector.load %arg3[%c3, %c0_41] : memref<16x128xf32, #tpu.memory_space<vmem>>, vector<1x8xf32>
    %93 = vector.broadcast %92 : vector<1x8xf32> to vector<32x8xf32>
    %94 = arith.addf %91, %93 : vector<32x8xf32>
    %cst_42 = arith.constant 0.000000e+00 : f32
    %95 = vector.broadcast %cst_42 : f32 to vector<32x8xf32>
    %96 = arith.maximumf %94, %95 : vector<32x8xf32>
    %c4_i32_43 = arith.constant 4 : i32
    %97 = tpu.dynamic_rotate %96 by %c4_i32_43 dim 0 : vector<32x8xf32>, i32 -> vector<32x8xf32>
    %cst_44 = arith.constant 0.000000e+00 : f32
    %98 = vector.shape_cast %70 : vector<32x1xi1> to vector<32x1xi1>
    %99 = vector.broadcast %98 : vector<32x1xi1> to vector<32x8xi1>
    %100 = vector.broadcast %cst_44 : f32 to vector<32x8xf32>
    %101 = arith.select %99, %97, %100 : vector<32x8xi1>, vector<32x8xf32>
    %c64 = arith.constant 64 : index
    %c0_45 = arith.constant 0 : index
    %102 = vector.load %arg2[%c64, %c0_45] : memref<184x128xbf16, #tpu.memory_space<vmem>>, vector<8x8xbf16>
    %103 = arith.truncf %101 : vector<32x8xf32> to vector<32x8xbf16>
    %cst_46 = arith.constant dense<0.000000e+00> : vector<32x8xf32>
    %104 = tpu.matmul %103, %102, %cst_46 {dimension_numbers = #tpu.dot_dimension_numbers<[1], [0], [0], [1], [0, 0, 1, 1], [], []>} : vector<32x8xbf16>, vector<8x8xbf16>, vector<32x8xf32> -> vector<32x8xf32>
    %c2_i32_47 = arith.constant 2 : i32
    %105 = tpu.dynamic_rotate %96 by %c2_i32_47 dim 0 : vector<32x8xf32>, i32 -> vector<32x8xf32>
    %cst_48 = arith.constant 0.000000e+00 : f32
    %106 = vector.shape_cast %5 : vector<32x1xi1> to vector<32x1xi1>
    %107 = vector.broadcast %106 : vector<32x1xi1> to vector<32x8xi1>
    %108 = vector.broadcast %cst_48 : f32 to vector<32x8xf32>
    %109 = arith.select %107, %105, %108 : vector<32x8xi1>, vector<32x8xf32>
    %c72 = arith.constant 72 : index
    %c0_49 = arith.constant 0 : index
    %110 = vector.load %arg2[%c72, %c0_49] : memref<184x128xbf16, #tpu.memory_space<vmem>>, vector<8x8xbf16>
    %111 = arith.truncf %109 : vector<32x8xf32> to vector<32x8xbf16>
    %cst_50 = arith.constant dense<0.000000e+00> : vector<32x8xf32>
    %112 = tpu.matmul %111, %110, %cst_50 {dimension_numbers = #tpu.dot_dimension_numbers<[1], [0], [0], [1], [0, 0, 1, 1], [], []>} : vector<32x8xbf16>, vector<8x8xbf16>, vector<32x8xf32> -> vector<32x8xf32>
    %113 = arith.addf %104, %112 : vector<32x8xf32>
    %c80 = arith.constant 80 : index
    %c0_51 = arith.constant 0 : index
    %114 = vector.load %arg2[%c80, %c0_51] : memref<184x128xbf16, #tpu.memory_space<vmem>>, vector<8x8xbf16>
    %115 = arith.truncf %96 : vector<32x8xf32> to vector<32x8xbf16>
    %cst_52 = arith.constant dense<0.000000e+00> : vector<32x8xf32>
    %116 = tpu.matmul %115, %114, %cst_52 {dimension_numbers = #tpu.dot_dimension_numbers<[1], [0], [0], [1], [0, 0, 1, 1], [], []>} : vector<32x8xbf16>, vector<8x8xbf16>, vector<32x8xf32> -> vector<32x8xf32>
    %117 = arith.addf %113, %116 : vector<32x8xf32>
    %c4_53 = arith.constant 4 : index
    %c0_54 = arith.constant 0 : index
    %118 = vector.load %arg3[%c4_53, %c0_54] : memref<16x128xf32, #tpu.memory_space<vmem>>, vector<1x8xf32>
    %119 = vector.broadcast %118 : vector<1x8xf32> to vector<32x8xf32>
    %120 = arith.addf %117, %119 : vector<32x8xf32>
    %cst_55 = arith.constant 0.000000e+00 : f32
    %121 = vector.broadcast %cst_55 : f32 to vector<32x8xf32>
    %122 = arith.maximumf %120, %121 : vector<32x8xf32>
    %123 = arith.addf %122, %68 : vector<32x8xf32>
    %cst_56 = arith.constant 0.000000e+00 : f32
    %124 = vector.broadcast %cst_56 : f32 to vector<32x8xf32>
    %125 = arith.maximumf %123, %124 : vector<32x8xf32>
    %c8_i32 = arith.constant 8 : i32
    %126 = vector.broadcast %c8_i32 : i32 to vector<32x1xi32>
    %127 = arith.cmpi sge, %1, %126 : vector<32x1xi32>
    %c8_i32_57 = arith.constant 8 : i32
    %128 = tpu.dynamic_rotate %125 by %c8_i32_57 dim 0 : vector<32x8xf32>, i32 -> vector<32x8xf32>
    %cst_58 = arith.constant 0.000000e+00 : f32
    %129 = vector.shape_cast %127 : vector<32x1xi1> to vector<32x1xi1>
    %130 = vector.broadcast %129 : vector<32x1xi1> to vector<32x8xi1>
    %131 = vector.broadcast %cst_58 : f32 to vector<32x8xf32>
    %132 = arith.select %130, %128, %131 : vector<32x8xi1>, vector<32x8xf32>
    %c88 = arith.constant 88 : index
    %c0_59 = arith.constant 0 : index
    %133 = vector.load %arg2[%c88, %c0_59] : memref<184x128xbf16, #tpu.memory_space<vmem>>, vector<8x16xbf16>
    %134 = arith.truncf %132 : vector<32x8xf32> to vector<32x8xbf16>
    %cst_60 = arith.constant dense<0.000000e+00> : vector<32x16xf32>
    %135 = tpu.matmul %134, %133, %cst_60 {dimension_numbers = #tpu.dot_dimension_numbers<[1], [0], [0], [1], [0, 0, 1, 1], [], []>} : vector<32x8xbf16>, vector<8x16xbf16>, vector<32x16xf32> -> vector<32x16xf32>
    %c4_i32_61 = arith.constant 4 : i32
    %136 = tpu.dynamic_rotate %125 by %c4_i32_61 dim 0 : vector<32x8xf32>, i32 -> vector<32x8xf32>
    %cst_62 = arith.constant 0.000000e+00 : f32
    %137 = vector.shape_cast %70 : vector<32x1xi1> to vector<32x1xi1>
    %138 = vector.broadcast %137 : vector<32x1xi1> to vector<32x8xi1>
    %139 = vector.broadcast %cst_62 : f32 to vector<32x8xf32>
    %140 = arith.select %138, %136, %139 : vector<32x8xi1>, vector<32x8xf32>
    %c96 = arith.constant 96 : index
    %c0_63 = arith.constant 0 : index
    %141 = vector.load %arg2[%c96, %c0_63] : memref<184x128xbf16, #tpu.memory_space<vmem>>, vector<8x16xbf16>
    %142 = arith.truncf %140 : vector<32x8xf32> to vector<32x8xbf16>
    %cst_64 = arith.constant dense<0.000000e+00> : vector<32x16xf32>
    %143 = tpu.matmul %142, %141, %cst_64 {dimension_numbers = #tpu.dot_dimension_numbers<[1], [0], [0], [1], [0, 0, 1, 1], [], []>} : vector<32x8xbf16>, vector<8x16xbf16>, vector<32x16xf32> -> vector<32x16xf32>
    %144 = arith.addf %135, %143 : vector<32x16xf32>
    %c104 = arith.constant 104 : index
    %c0_65 = arith.constant 0 : index
    %145 = vector.load %arg2[%c104, %c0_65] : memref<184x128xbf16, #tpu.memory_space<vmem>>, vector<8x16xbf16>
    %146 = arith.truncf %125 : vector<32x8xf32> to vector<32x8xbf16>
    %cst_66 = arith.constant dense<0.000000e+00> : vector<32x16xf32>
    %147 = tpu.matmul %146, %145, %cst_66 {dimension_numbers = #tpu.dot_dimension_numbers<[1], [0], [0], [1], [0, 0, 1, 1], [], []>} : vector<32x8xbf16>, vector<8x16xbf16>, vector<32x16xf32> -> vector<32x16xf32>
    %148 = arith.addf %144, %147 : vector<32x16xf32>
    %c5 = arith.constant 5 : index
    %c0_67 = arith.constant 0 : index
    %149 = vector.load %arg3[%c5, %c0_67] : memref<16x128xf32, #tpu.memory_space<vmem>>, vector<1x16xf32>
    %150 = vector.broadcast %149 : vector<1x16xf32> to vector<32x16xf32>
    %151 = arith.addf %148, %150 : vector<32x16xf32>
    %cst_68 = arith.constant 0.000000e+00 : f32
    %152 = vector.broadcast %cst_68 : f32 to vector<32x16xf32>
    %153 = arith.maximumf %151, %152 : vector<32x16xf32>
    %154 = vector.shape_cast %153 : vector<32x16xf32> to vector<2x16x16xf32>
    %c112 = arith.constant 112 : index
    %c0_69 = arith.constant 0 : index
    %155 = vector.load %arg2[%c112, %c0_69] : memref<184x128xbf16, #tpu.memory_space<vmem>>, vector<16x16xbf16>
    %156 = vector.extract_strided_slice %154 {offsets = [0, 7, 0], sizes = [2, 1, 16], strides = [1, 1, 1]} : vector<2x16x16xf32> to vector<2x1x16xf32>
    %157 = vector.shape_cast %156 : vector<2x1x16xf32> to vector<2x16xf32>
    %158 = arith.truncf %157 : vector<2x16xf32> to vector<2x16xbf16>
    %cst_70 = arith.constant dense<0.000000e+00> : vector<2x16xf32>
    %159 = tpu.matmul %158, %155, %cst_70 {dimension_numbers = #tpu.dot_dimension_numbers<[1], [0], [0], [1], [0, 0, 1, 1], [], []>} : vector<2x16xbf16>, vector<16x16xbf16>, vector<2x16xf32> -> vector<2x16xf32>
    %c128 = arith.constant 128 : index
    %c0_71 = arith.constant 0 : index
    %160 = vector.load %arg2[%c128, %c0_71] : memref<184x128xbf16, #tpu.memory_space<vmem>>, vector<16x16xbf16>
    %161 = vector.extract_strided_slice %154 {offsets = [0, 11, 0], sizes = [2, 1, 16], strides = [1, 1, 1]} : vector<2x16x16xf32> to vector<2x1x16xf32>
    %162 = vector.shape_cast %161 : vector<2x1x16xf32> to vector<2x16xf32>
    %163 = arith.truncf %162 : vector<2x16xf32> to vector<2x16xbf16>
    %cst_72 = arith.constant dense<0.000000e+00> : vector<2x16xf32>
    %164 = tpu.matmul %163, %160, %cst_72 {dimension_numbers = #tpu.dot_dimension_numbers<[1], [0], [0], [1], [0, 0, 1, 1], [], []>} : vector<2x16xbf16>, vector<16x16xbf16>, vector<2x16xf32> -> vector<2x16xf32>
    %165 = arith.addf %159, %164 : vector<2x16xf32>
    %c144 = arith.constant 144 : index
    %c0_73 = arith.constant 0 : index
    %166 = vector.load %arg2[%c144, %c0_73] : memref<184x128xbf16, #tpu.memory_space<vmem>>, vector<16x16xbf16>
    %167 = vector.extract_strided_slice %154 {offsets = [0, 15, 0], sizes = [2, 1, 16], strides = [1, 1, 1]} : vector<2x16x16xf32> to vector<2x1x16xf32>
    %168 = vector.shape_cast %167 : vector<2x1x16xf32> to vector<2x16xf32>
    %169 = arith.truncf %168 : vector<2x16xf32> to vector<2x16xbf16>
    %cst_74 = arith.constant dense<0.000000e+00> : vector<2x16xf32>
    %170 = tpu.matmul %169, %166, %cst_74 {dimension_numbers = #tpu.dot_dimension_numbers<[1], [0], [0], [1], [0, 0, 1, 1], [], []>} : vector<2x16xbf16>, vector<16x16xbf16>, vector<2x16xf32> -> vector<2x16xf32>
    %171 = arith.addf %165, %170 : vector<2x16xf32>
    %c6 = arith.constant 6 : index
    %c0_75 = arith.constant 0 : index
    %172 = vector.load %arg3[%c6, %c0_75] : memref<16x128xf32, #tpu.memory_space<vmem>>, vector<1x16xf32>
    %173 = vector.broadcast %172 : vector<1x16xf32> to vector<2x16xf32>
    %174 = arith.addf %171, %173 : vector<2x16xf32>
    %cst_76 = arith.constant 0.000000e+00 : f32
    %175 = vector.broadcast %cst_76 : f32 to vector<2x16xf32>
    %176 = arith.maximumf %174, %175 : vector<2x16xf32>
    %177 = vector.shape_cast %125 : vector<32x8xf32> to vector<2x16x8xf32>
    %178 = vector.extract_strided_slice %177 {offsets = [0, 15, 0], sizes = [2, 1, 8], strides = [1, 1, 1]} : vector<2x16x8xf32> to vector<2x1x8xf32>
    %179 = vector.shape_cast %178 : vector<2x1x8xf32> to vector<2x8xf32>
    %c160 = arith.constant 160 : index
    %c0_77 = arith.constant 0 : index
    %180 = vector.load %arg2[%c160, %c0_77] : memref<184x128xbf16, #tpu.memory_space<vmem>>, vector<8x16xbf16>
    %181 = arith.truncf %179 : vector<2x8xf32> to vector<2x8xbf16>
    %cst_78 = arith.constant dense<0.000000e+00> : vector<2x16xf32>
    %182 = tpu.matmul %181, %180, %cst_78 {dimension_numbers = #tpu.dot_dimension_numbers<[1], [0], [0], [1], [0, 0, 1, 1], [], []>} : vector<2x8xbf16>, vector<8x16xbf16>, vector<2x16xf32> -> vector<2x16xf32>
    %c7 = arith.constant 7 : index
    %c0_79 = arith.constant 0 : index
    %183 = vector.load %arg3[%c7, %c0_79] : memref<16x128xf32, #tpu.memory_space<vmem>>, vector<1x16xf32>
    %184 = vector.broadcast %183 : vector<1x16xf32> to vector<2x16xf32>
    %185 = arith.addf %182, %184 : vector<2x16xf32>
    %186 = arith.addf %176, %185 : vector<2x16xf32>
    %cst_80 = arith.constant 0.000000e+00 : f32
    %187 = vector.broadcast %cst_80 : f32 to vector<2x16xf32>
    %188 = arith.maximumf %186, %187 : vector<2x16xf32>
    %c168 = arith.constant 168 : index
    %c0_81 = arith.constant 0 : index
    %189 = vector.load %arg2[%c168, %c0_81] : memref<184x128xbf16, #tpu.memory_space<vmem>>, vector<16x128xbf16>
    %c8_82 = arith.constant 8 : index
    %c0_83 = arith.constant 0 : index
    %190 = vector.load %arg3[%c8_82, %c0_83] : memref<16x128xf32, #tpu.memory_space<vmem>>, vector<1x128xf32>
    %191 = arith.truncf %188 : vector<2x16xf32> to vector<2x16xbf16>
    %cst_84 = arith.constant dense<0.000000e+00> : vector<2x128xf32>
    %192 = tpu.matmul %191, %189, %cst_84 {dimension_numbers = #tpu.dot_dimension_numbers<[1], [0], [0], [1], [0, 0, 1, 1], [], []>} : vector<2x16xbf16>, vector<16x128xbf16>, vector<2x128xf32> -> vector<2x128xf32>
    %193 = vector.broadcast %190 : vector<1x128xf32> to vector<2x128xf32>
    %194 = arith.addf %192, %193 : vector<2x128xf32>
    %c0_85 = arith.constant 0 : index
    %c0_86 = arith.constant 0 : index
    %195 = vector.load %arg4[%c0_85, %c0_86] : memref<2x128xf32, #tpu.memory_space<vmem>>, vector<2x128xf32>
    tpu.vector_store %arg4[%c0_85, %c0_86], %194 {strides = array<i32>} : memref<2x128xf32, #tpu.memory_space<vmem>>, vector<2x128xf32>,
    return
  }
  func.func @transform_0(%arg0: i32) -> (i32, i32, i32) {
    %c0_i32 = arith.constant 0 : i32
    %c0_i32_0 = arith.constant 0 : i32
    %c0_i32_1 = arith.constant 0 : i32
    return %arg0, %c0_i32, %c0_i32_0 : i32, i32, i32
  }
  func.func @transform_1(%arg0: i32) -> (i32, i32) {
    %c0_i32 = arith.constant 0 : i32
    %c0_i32_0 = arith.constant 0 : i32
    %c0_i32_1 = arith.constant 0 : i32
    return %c0_i32, %c0_i32_0 : i32, i32
  }
  func.func @transform_2(%arg0: i32) -> (i32, i32) {
    %c0_i32 = arith.constant 0 : i32
    %c0_i32_0 = arith.constant 0 : i32
    %c0_i32_1 = arith.constant 0 : i32
    return %c0_i32, %c0_i32_0 : i32, i32
  }
  func.func @transform_3(%arg0: i32) -> (i32, i32) {
    %c0_i32 = arith.constant 0 : i32
    %c0_i32_0 = arith.constant 0 : i32
    return %arg0, %c0_i32 : i32, i32
  }
}

</mosaic_0001>

<bundles_post_ra>
// kernel: tpu_custom_call.1
= control target key start
LH: loop header
LB: loop body
LE: loop exit
PB: predicated region body
PF: predicated region fallthrough
CT: control target
= control target key end

     0   :  { %8 = vsyncpa [#allocation3], 0  ;;  %s2285_s0 = inlined_call_operand.vmem [shape: f32[2,16,4], index: 0, kind: input, shape index: {}]   ;;  %s2286_s1 = inlined_call_operand.hbm [shape: bf16[184,128], index: 1, kind: input, shape index: {}]   ;;  %s2287_s2 = inlined_call_operand.vmem [shape: f32[16,128], index: 2, kind: input, shape index: {}]   ;;  %s2288_s3 = inlined_call_operand.hbm [shape: f32[2,128], index: 3, kind: output, shape index: {}]  }
   0x1   :  { %9 = vsyncpa [#allocation4], 0  ;;  %s1965_s12 = smov [#allocation2]   ;;  %s1917_s16 = scalar_lea.hbm %s2286_s1, 1472 }
   0x2   :  { %s17_s13 = sshll.u32 %s1965_s12, 4  ;;  %p1918_p0 = scmp.ne.s32.totalorder %s2286_s1, %s1917_s16  ;;  %s18_s13 = int_to_ptr.vmem [resolvable:$true] %s17_s13 }
   0x3   :  { %p1921_p1 = scmp.lt.u32.totalorder %s1917_s16, %s2286_s1 }
   0x5   :  { %p1923_p2 = pnand %p1921_p1, %p1918_p0 }
   0x7   :  { %1926 = shalt.err (!%p1923_p2)
}
   0x8   :  { %s1927_s21 = scalar_lea.vmem %s18_s13, 1472  ;;  %p1932_p4 = scmp.lt.s32.totalorder %s18_s13, %s18_s13 }
   0x9   :  { %p1928_p3 = scmp.ne.s32.totalorder %s18_s13, %s1927_s21  ;;  %p1933_p5 = scmp.lt.s32.totalorder %s1927_s21, %s1927_s21 }
   0xb   :  { %p1934_p6 = por %p1933_p5, %p1932_p4 }
   0xd   :  { %p1935_p7 = pnand %p1934_p6, %p1928_p3 }
   0xf   :  { %1938 = shalt.err (!%p1935_p7)
}
  0x10   :  { %s1966_s22 = smov 64   ;;  %s1967_s23 = smov 4  }
  0x11   :  { %23 = dma.hbm_to_vmem [thread:$0]  %s2286_s1, 1472, %s18_s13, [#allocation3], %s1966_s22, %s1966_s22, %s1967_s23  }
  0x12   :  { %1961 = dma.done.wait [#allocation3], 1472  }
  0x13   :  { %1962 = vsyncadd [#allocation3], 4294965824  ;;  %v30_v0 = vlaneseq  ;;  %vm92_vm0 = vcmask 1041408   ;;  %vm85_vm3 = vcmask 31744   ;;  %v33_v3 = vld [vmem:[%s2285_s0] sm:$0xff]  ;;  %v34_v4 = vld [vmem:[%s2285_s0 + $0x8] sm:$0xff] }
  0x14   :  { %v1908_v2 = vld [vmem:[#allocation2] ss:$0 sps:$4 sm:$0xcc]   ;;  %v36_v5 = vld [vmem:[%s2285_s0 + $0x18] sm:$0xff]  ;;  %v39_v6 = vrot.slane %v33_v3, 6  ;;  %v61_v7 = vrot.slane %v33_v3, 7  ;;  %v204_v36 = vpack.c.bf16 %v34_v4, %v33_v3 }
  0x15   :  { %v2003_v1 = vshrl.u32 %v30_v0, 7  ;;  %v35_v8 = vld [vmem:[%s2285_s0 + $0x10] sm:$0xff]  ;;  %v84_v9 = vrot.slane %v1908_v2, 2  ;;  %v40_v10 = vrot.slane %v34_v4, 6  ;;  %v42_v11 = vrot.slane %v36_v5, 6  ;;  %s1970_s23 = smov [#allocation5]  }
  0x16   :  { %v62_v12 = vrot.slane %v34_v4, 7  ;;  %v56_v13 = vld [vmem:[#allocation2] sm:$0x3]  ;;  %v64_v14 = vrot.slane %v36_v5, 7  ;;  %v63_v15 = vrot.slane %v35_v8, 7  ;;  %v41_v30 = vrot.slane %v35_v8, 6 }
  0x17   :  { %vm43_vm1 = vcmp.lt.s32.totalorder %v2003_v1, 2  ;;  %vm65_vm2 = vcmp.lt.s32.totalorder %v2003_v1, 1  ;;  %vm37_vm4 = vcmp.ge.s32.totalorder %v2003_v1, 2  ;;  %vm59_vm5 = vcmp.ge.s32.totalorder %v2003_v1, 1  ;;  %1886 = vmatprep.subr.msk.bf16.mxu0 %vm92_vm0, %v84_v9  ;;  %v203_v31 = vld [vmem:[#allocation2 + $0x4] sm:$0x3] }
  0x18   :  { %v152_v16 = vsel %vm92_vm0, %v56_v13, 0  ;;  %v94_v17 = vsel %vm92_vm0, %v84_v9, 0  ;;  %v68_v18 = vsel %vm65_vm2, %v61_v7, %v62_v12  ;;  %v46_v19 = vsel %vm43_vm1, %v39_v6, %v40_v10  ;;  %v1909_v39 = vld [vmem:[#allocation2 + $0x8] sm:$0x3c]   ;;  %v1910_v42 = vld [vmem:[#allocation2 + $0x4] sm:$0x3c]  }
  0x19   :  { %v47_v20 = vsel %vm43_vm1, %v42_v11, %v39_v6  ;;  %1721 = vmatpush3.bf16.msra.mxu0 %v94_v17  ;;  %v69_v21 = vsel %vm65_vm2, %v64_v14, %v61_v7  ;;  %v66_v22 = vsel %vm65_vm2, %v63_v15, %v64_v14  ;;  %v67_v23 = vsel %vm65_vm2, %v62_v12, %v63_v15  ;;  %v1912_v44 = vld [vmem:[#allocation2 + $0x10] ss:$0 sps:$4 sm:$0xcc]   ;;  %s1598_s24 = sshll.u32 %s1970_s23, 4  ;;  %s1599_s24 = int_to_ptr.vmem [resolvable:$true] %s1598_s24 }
  0x1a   :  { %v52_v24 = vsel %vm37_vm4, %v47_v20, 0.0  ;;  %v74_v25 = vsel %vm59_vm5, %v69_v21, 0.0  ;;  %v76_v26 = vsel %vm59_vm5, %v67_v23, 0.0  ;;  %1887 = vmatprep.subr.msk.bf16.mxu0 %vm92_vm0, %v56_v13  ;;  %v45_v32 = vsel %vm43_vm1, %v40_v10, %v41_v30  ;;  %v1614_v47 = vld [vmem:[%s2287_s2] ss:$0 sm:$0xff]  ;;  %s1939_s25 = scalar_lea.vmem %s1599_s24, 32  ;;  %p1944_p9 = scmp.lt.s32.totalorder %s1599_s24, %s1599_s24 }
  0x1b   :  { %v79_v27 = vpack.c.bf16 %v68_v18, %v74_v25  ;;  %v80_v28 = vpack.c.bf16 %v66_v22, %v76_v26  ;;  %v57_v29 = vpack.c.bf16 %v46_v19, %v52_v24  ;;  %v44_v33 = vsel %vm43_vm1, %v41_v30, %v42_v11  ;;  %p1940_p8 = scmp.ne.s32.totalorder %s1599_s24, %s1939_s25  ;;  %p1945_p10 = scmp.lt.s32.totalorder %s1939_s25, %s1939_s25 }
  0x1c   :  { %v54_v34 = vsel %vm37_vm4, %v45_v32, 0.0  ;;  %v213_v37 = vsel %vm92_vm0, %v203_v31, 0  ;;  %v205_v38 = vpack.c.bf16 %v36_v5, %v35_v8  ;;  %v318_v40 = vrot.slane %v1909_v39, 2  ;;  %v1911_v8 = vld [vmem:[#allocation2 + $0xc] sm:$0x3c]  }
  0x1d   :  { %1722 = vmatprep.mubr.msk.bf16.mxu0 %vm85_vm3, %v79_v27  ;;  %v58_v35 = vpack.c.bf16 %v44_v33, %v54_v34  ;;  %vm326_vm6 = vcmask 1043456   ;;  %v384_v43 = vrot.slane %v1910_v42, 2  ;;  %v537_v45 = vrot.slane %v1912_v44, 2  ;;  %v617_v33 = vld [vmem:[#allocation2 + $0x14] sm:$0xf]  ;;  %p1946_p11 = por %p1945_p10, %p1944_p9 }
  0x1e   :  { %1723 = vmatmul.mubr.msk.bf16.vlgmr.msra.gmra.mrb[0].mxu0 %vm85_vm3, %v80_v28  ;;  %1889 = vmatprep.subr.msk.bf16.mxu1 %vm326_vm6, %v318_v40  ;;  %v328_v41 = vsel %vm326_vm6, %v318_v40, 0  ;;  %vm319_vm7 = vcmask 64512   ;;  %v452_v24 = vrot.slane %v1911_v8, 2  ;;  %v1624_v34 = vld [vmem:[%s2287_s2 + $0x1] ss:$0 sm:$0xff]  ;;  %vm604_vm8 = vcmp.lt.s32.totalorder %v2003_v1, 4 }
  0x1f   :  { %1727 = vmatpush3.bf16.msra.mxu0 %v152_v16  ;;  %1728 = vmatprep.mubr.msk.bf16.mxu0 %vm85_vm3, %v57_v29  ;;  %v539_v46 = vsel %vm92_vm0, %v537_v45, 0  ;;  %v392_v7 = vsel %vm326_vm6, %v384_v43, 0  ;;  %vm598_vm9 = vcmp.ge.s32.totalorder %v2003_v1, 4  ;;  %vm1969_vm10 = vmmov 0   ;;  %p1947_p12 = pnand %p1946_p11, %p1940_p8 }
  0x20   :  { %1888 = vmatprep.subr.msk.bf16.mxu0 %vm92_vm0, %v203_v31  ;;  %1739 = vmatpush3.bf16.msra.mxu1 %v328_v41  ;;  %v460_v26 = vsel %vm326_vm6, %v452_v24, 0  ;;  %v632_v31 = vld [vmem:[#allocation2 + $0x18] sm:$0xf]  ;;  %vm1297_vm11 = vcmask 1041409   ;;  %vm1306_vm12 = vcmask 130048  }
  0x21   :  { %1890 = vmatprep.subr.msk.bf16.mxu1 %vm326_vm6, %v384_v43  ;;  %v642_v32 = vsel %vm326_vm6, %v632_v31, 0 }
  0x2a   :  { %1729 = vmatmul.mubr.msk.bf16.vlgmr.msra.gmra.mrb[0].mxu0 %vm85_vm3, %v58_v35  ;;  %v1625_v35 = vld [vmem:[%s2287_s2 + $0x2] ss:$0 sm:$0xff] }
  0x2b   :  { %1733 = vmatpush3.bf16.msra.mxu0 %v213_v37  ;;  %1734 = vmatprep.mubr.msk.bf16.mxu0 %vm85_vm3, %v204_v36 }
  0x2c   :  { %1892 = vmatprep.subr.msk.bf16.mxu0 %vm92_vm0, %v537_v45 }
  0x36   :  { %1735 = vmatmul.mubr.msk.bf16.vlgmr.msra.gmra.mrb[0].mxu0 %vm85_vm3, %v205_v38 }
  0x37   :  { %1758 = vmatprep.mubr.msk.bf16.mxu0 %vm85_vm3, %v204_v36  ;;  %1757 = vmatpush3.bf16.msra.mxu0 %v539_v46 }
  0x3e   :  { %1759 = vmatmul.mubr.msk.bf16.vlgmr.msra.gmra.mrb[4].mxu0 %vm85_vm3, %v205_v38 }
 0x109   :  { %v1736_v48 = vpop.f32.mrb[0].mxu0 }
 0x10a   :  { %v275_v49 = vadd.f32 %v1736_v48, %v1614_v47  ;;  %v249_v50 = vpop.f32.mrb[1].mxu0 }
 0x10b   :  { %v273_v51 = vadd.f32 %v1614_v47, %v249_v50  ;;  %v1737_v52 = vpop.f32.mrb[2].mxu0 }
 0x10c   :  { %v279_v53 = vmax.f32 %v275_v49, 0.0  ;;  %v276_v54 = vadd.f32 %v1737_v52, %v1614_v47  ;;  %v252_v55 = vpop.f32.mrb[3].mxu0 }
 0x10d   :  { %v277_v56 = vmax.f32 %v273_v51, 0.0  ;;  %v274_v57 = vadd.f32 %v1614_v47, %v252_v55 }
 0x10e   :  { %v280_v58 = vmax.f32 %v276_v54, 0.0  ;;  %v283_v59 = vrot.slane %v279_v53, 6  ;;  %v299_v63 = vrot.slane %v279_v53, 7 }
 0x10f   :  { %v281_v60 = vrot.slane %v277_v56, 6  ;;  %v297_v61 = vrot.slane %v277_v56, 7  ;;  %v278_v62 = vmax.f32 %v274_v57, 0.0 }
 0x110   :  { %v284_v0 = vrot.slane %v280_v58, 6  ;;  %v300_v2 = vrot.slane %v280_v58, 7  ;;  %v446_v3 = vpack.c.bf16 %v280_v58, %v279_v53 }
 0x111   :  { %v282_v4 = vrot.slane %v278_v62, 6  ;;  %v298_v5 = vrot.slane %v278_v62, 7  ;;  %v445_v6 = vpack.c.bf16 %v278_v62, %v277_v56  ;;  %v1760_v27 = vpop.f32.mrb[4].mxu0 }
 0x112   :  { %v285_v9 = vsel %vm43_vm1, %v283_v59, %v284_v0  ;;  %v304_v10 = vsel %vm65_vm2, %v300_v2, %v297_v61  ;;  %v301_v11 = vsel %vm65_vm2, %v299_v63, %v300_v2  ;;  %v288_v12 = vsel %vm43_vm1, %v284_v0, %v281_v60  ;;  %v575_v28 = vpop.f32.mrb[5].mxu0 }
 0x113   :  { %v286_v13 = vsel %vm43_vm1, %v282_v4, %v283_v59  ;;  %v303_v14 = vsel %vm65_vm2, %v297_v61, %v298_v5  ;;  %v305_v15 = vsel %vm59_vm5, %v304_v10, 0.0  ;;  %v302_v16 = vsel %vm65_vm2, %v298_v5, %v299_v63  ;;  %v1761_v29 = vpop.f32.mrb[6].mxu0 }
 0x114   :  { %v291_v17 = vsel %vm37_vm4, %v286_v13, 0.0  ;;  %v311_v18 = vpack.c.bf16 %v303_v14, %v305_v15  ;;  %v307_v19 = vsel %vm59_vm5, %v302_v16, 0.0  ;;  %v287_v20 = vsel %vm43_vm1, %v281_v60, %v282_v4  ;;  %v578_v30 = vpop.f32.mrb[7].mxu0 }
 0x115   :  { %v312_v21 = vpack.c.bf16 %v301_v11, %v307_v19  ;;  %v289_v22 = vsel %vm37_vm4, %v288_v12, 0.0  ;;  %v296_v23 = vpack.c.bf16 %v285_v9, %v291_v17  ;;  %v584_v38 = vadd.f32 %v1760_v27, %v1625_v35  ;;  %v751_v17 = vld [vmem:[#allocation2 + $0x1c] sm:$0xf] }
 0x116   :  { %1740 = vmatprep.mubr.msk.bf16.mxu1 %vm319_vm7, %v311_v18  ;;  %v295_v25 = vpack.c.bf16 %v287_v20, %v289_v22  ;;  %v576_v41 = vadd.f32 %v1625_v35, %v575_v28  ;;  %v587_v50 = vadd.f32 %v1761_v29, %v1625_v35  ;;  %v579_v53 = vadd.f32 %v1625_v35, %v578_v30  ;;  %v841_v28 = vld [vmem:[#allocation2 + $0x20] sm:$0xf]  ;;  %v1635_v29 = vld [vmem:[%s2287_s2 + $0x3] ss:$0 sm:$0xff] }
 0x117   :  { %1741 = vmatmul.mubr.msk.bf16.vlgmr.msra.gmra.mrb[0].mxu1 %vm319_vm7, %v312_v21  ;;  %v700_v15 = vsel %vm326_vm6, %v617_v33, 0 }
 0x118   :  { %1745 = vmatpush3.bf16.msra.mxu1 %v392_v7  ;;  %1746 = vmatprep.mubr.msk.bf16.mxu1 %vm319_vm7, %v295_v25 }
 0x119   :  { %1891 = vmatprep.subr.msk.bf16.mxu1 %vm326_vm6, %v452_v24 }
 0x123   :  { %1747 = vmatmul.mubr.msk.bf16.vlgmr.msra.gmra.mrb[0].mxu1 %vm319_vm7, %v296_v23  ;;  %v761_v23 = vsel %vm326_vm6, %v751_v17, 0 }
 0x124   :  { %1751 = vmatpush3.bf16.msra.mxu1 %v460_v26  ;;  %1752 = vmatprep.mubr.msk.bf16.mxu1 %vm319_vm7, %v445_v6  ;;  %v856_v26 = vld [vmem:[#allocation2 + $0x24] sm:$0xf] }
 0x125   :  { %1893 = vmatprep.subr.msk.bf16.mxu1 %vm326_vm6, %v632_v31  ;;  %1896 = vmatprep.subr.msk.bf16.mxu0 %vm326_vm6, %v856_v26  ;;  %v866_v27 = vsel %vm326_vm6, %v856_v26, 0 }
 0x126   :  { %1781 = vmatpush3.bf16.msra.mxu0 %v866_v27 }
 0x127   :  { %1897 = vmatprep.subr.msk.bf16.mxu0 %vm326_vm6, %v841_v28 }
 0x12f   :  { %1753 = vmatmul.mubr.msk.bf16.vlgmr.msra.gmra.mrb[0].mxu1 %vm319_vm7, %v446_v3 }
 0x130   :  { %1763 = vmatpush3.bf16.msra.mxu1 %v642_v32 }
 0x131   :  { %1894 = vmatprep.subr.msk.bf16.mxu1 %vm326_vm6, %v617_v33 }
 0x202   :  { %v1754_v36 = vpop.f32.mrb[0].mxu1 }
 0x203   :  { %v522_v37 = vadd.f32 %v1754_v36, %v1624_v34  ;;  %v496_v39 = vpop.f32.mrb[1].mxu1 }
 0x204   :  { %v520_v40 = vadd.f32 %v1624_v34, %v496_v39  ;;  %v1755_v42 = vpop.f32.mrb[2].mxu1 }
 0x205   :  { %v526_v43 = vmax.f32 %v522_v37, 0.0  ;;  %v523_v44 = vadd.f32 %v1755_v42, %v1624_v34  ;;  %v499_v45 = vpop.f32.mrb[3].mxu1 }
 0x206   :  { %v524_v46 = vmax.f32 %v520_v40, 0.0  ;;  %v521_v47 = vadd.f32 %v1624_v34, %v499_v45 }
 0x207   :  { %v592_v48 = vadd.f32 %v584_v38, %v526_v43  ;;  %v527_v49 = vmax.f32 %v523_v44, 0.0 }
 0x208   :  { %v590_v51 = vadd.f32 %v576_v41, %v524_v46  ;;  %v525_v52 = vmax.f32 %v521_v47, 0.0 }
 0x209   :  { %v593_v54 = vadd.f32 %v587_v50, %v527_v49  ;;  %v2109_v55 = vmax.f32 %v592_v48, 0.0 }
 0x20a   :  { %v2111_v56 = vmax.f32 %v590_v51, 0.0  ;;  %v591_v57 = vadd.f32 %v579_v53, %v525_v52 }
 0x20b   :  { %v2113_v58 = vmax.f32 %v593_v54, 0.0  ;;  %v622_v0 = vrot.slane %v2109_v55, 6  ;;  %v602_v18 = vrot.slane %v2109_v55, 4 }
 0x20c   :  { %v600_v59 = vrot.slane %v2111_v56, 4  ;;  %v620_v60 = vrot.slane %v2111_v56, 6  ;;  %v2118_v61 = vmax.f32 %v591_v57, 0.0 }
 0x20d   :  { %v603_v62 = vrot.slane %v2113_v58, 4  ;;  %v623_v63 = vrot.slane %v2113_v58, 6  ;;  %v753_v25 = vpack.c.bf16 %v2113_v58, %v2109_v55 }
 0x20e   :  { %v601_v2 = vrot.slane %v2118_v61, 4  ;;  %v621_v3 = vrot.slane %v2118_v61, 6  ;;  %v752_v24 = vpack.c.bf16 %v2118_v61, %v2111_v56 }
 0x20f   :  { %v627_v4 = vsel %vm43_vm1, %v623_v63, %v620_v60  ;;  %v608_v5 = vsel %vm604_vm8, %v603_v62, %v600_v59  ;;  %v624_v11 = vsel %vm43_vm1, %v622_v0, %v623_v63  ;;  %v605_v21 = vsel %vm604_vm8, %v602_v18, %v603_v62 }
 0x210   :  { %v626_v6 = vsel %vm43_vm1, %v620_v60, %v621_v3  ;;  %v628_v7 = vsel %vm37_vm4, %v627_v4, 0.0  ;;  %v625_v8 = vsel %vm43_vm1, %v621_v3, %v622_v0  ;;  %v607_v9 = vsel %vm604_vm8, %v600_v59, %v601_v2 }
 0x211   :  { %v633_v10 = vpack.c.bf16 %v626_v6, %v628_v7  ;;  %v630_v12 = vsel %vm37_vm4, %v625_v8, 0.0  ;;  %v613_v13 = vsel %vm598_vm9, %v608_v5, 0.0  ;;  %v606_v19 = vsel %vm604_vm8, %v601_v2, %v602_v18 }
 0x212   :  { %v634_v14 = vpack.c.bf16 %v624_v11, %v630_v12  ;;  %v618_v16 = vpack.c.bf16 %v607_v9, %v613_v13  ;;  %v615_v20 = vsel %vm598_vm9, %v606_v19, 0.0  ;;  %v924_v6 = vsel %vm326_vm6, %v841_v28, 0  ;;  %v1086_v13 = vld [vmem:[#allocation2 + $0x30] sm:$0xf] }
 0x213   :  { %1764 = vmatprep.mubr.msk.bf16.mxu1 %vm319_vm7, %v633_v10  ;;  %v619_v22 = vpack.c.bf16 %v605_v21, %v615_v20  ;;  %v975_v10 = vld [vmem:[#allocation2 + $0x28] sm:$0xf]  ;;  %v1968_v12 = vmov 0.0  }
 0x214   :  { %1765 = vmatmul.mubr.msk.bf16.vlgmr.msra.gmra.mrb[4].mxu1 %vm319_vm7, %v634_v14  ;;  %v985_v11 = vsel %vm326_vm6, %v975_v10, 0  ;;  %v1096_v14 = vsel %vm326_vm6, %v1086_v13, 0 }
 0x215   :  { %1769 = vmatpush3.bf16.msra.mxu1 %v700_v15  ;;  %1770 = vmatprep.mubr.msk.bf16.mxu1 %vm319_vm7, %v618_v16  ;;  %v1071_v15 = vld [vmem:[#allocation2 + $0x2c] sm:$0xf]  ;;  %v1642_v16 = vld [vmem:[%s2287_s2 + $0x4] ss:$0 sm:$0xff] }
 0x216   :  { %1895 = vmatprep.subr.msk.bf16.mxu1 %vm326_vm6, %v751_v17 }
 0x220   :  { %1771 = vmatmul.mubr.msk.bf16.vlgmr.msra.gmra.mrb[4].mxu1 %vm319_vm7, %v619_v22 }
 0x221   :  { %1775 = vmatpush3.bf16.msra.mxu1 %v761_v23  ;;  %1776 = vmatprep.mubr.msk.bf16.mxu1 %vm319_vm7, %v752_v24 }
 0x222   :  { %1899 = vmatprep.subr.msk.bf16.mxu1 %vm326_vm6, %v1086_v13 }
 0x22c   :  { %1777 = vmatmul.mubr.msk.bf16.vlgmr.msra.gmra.mrb[4].mxu1 %vm319_vm7, %v753_v25 }
 0x22d   :  { %1799 = vmatpush3.bf16.msra.mxu1 %v1096_v14 }
 0x22e   :  { %1900 = vmatprep.subr.msk.bf16.mxu1 %vm326_vm6, %v1071_v15 }
 0x2ff   :  { %v1778_v30 = vpop.f32.mrb[4].mxu1 }
 0x300   :  { %v823_v31 = vadd.f32 %v1778_v30, %v1635_v29  ;;  %v797_v32 = vpop.f32.mrb[5].mxu1 }
 0x301   :  { %v821_v33 = vadd.f32 %v1635_v29, %v797_v32  ;;  %v1779_v34 = vpop.f32.mrb[6].mxu1 }
 0x302   :  { %v827_v35 = vmax.f32 %v823_v31, 0.0  ;;  %v824_v36 = vadd.f32 %v1779_v34, %v1635_v29  ;;  %v800_v37 = vpop.f32.mrb[7].mxu1 }
 0x303   :  { %v825_v38 = vmax.f32 %v821_v33, 0.0  ;;  %v822_v39 = vadd.f32 %v1635_v29, %v800_v37 }
 0x304   :  { %v828_v40 = vmax.f32 %v824_v36, 0.0  ;;  %v831_v41 = vrot.slane %v827_v35, 4  ;;  %v846_v45 = vrot.slane %v827_v35, 6 }
 0x305   :  { %v829_v42 = vrot.slane %v825_v38, 4  ;;  %v844_v43 = vrot.slane %v825_v38, 6  ;;  %v826_v44 = vmax.f32 %v822_v39, 0.0 }
 0x306   :  { %v832_v46 = vrot.slane %v828_v40, 4  ;;  %v847_v47 = vrot.slane %v828_v40, 6  ;;  %v977_v48 = vpack.c.bf16 %v828_v40, %v827_v35 }
 0x307   :  { %v830_v49 = vrot.slane %v826_v44, 4  ;;  %v845_v50 = vrot.slane %v826_v44, 6  ;;  %v976_v51 = vpack.c.bf16 %v826_v44, %v825_v38 }
 0x308   :  { %v833_v52 = vsel %vm604_vm8, %v831_v41, %v832_v46  ;;  %v848_v53 = vsel %vm43_vm1, %v846_v45, %v847_v47  ;;  %v851_v54 = vsel %vm43_vm1, %v847_v47, %v844_v43  ;;  %v836_v57 = vsel %vm604_vm8, %v832_v46, %v829_v42 }
 0x309   :  { %v834_v59 = vsel %vm604_vm8, %v830_v49, %v831_v41  ;;  %v849_v60 = vsel %vm43_vm1, %v845_v50, %v846_v45  ;;  %v850_v62 = vsel %vm43_vm1, %v844_v43, %v845_v50  ;;  %v852_v63 = vsel %vm37_vm4, %v851_v54, 0.0 }
 0x30a   :  { %v839_v0 = vsel %vm598_vm9, %v834_v59, 0.0  ;;  %v854_v2 = vsel %vm37_vm4, %v849_v60, 0.0  ;;  %v857_v3 = vpack.c.bf16 %v850_v62, %v852_v63  ;;  %v835_v4 = vsel %vm604_vm8, %v829_v42, %v830_v49  ;;  %v1470_v62 = vld [vmem:[#allocation2 + $0x50] sm:$0xf] }
 0x30b   :  { %v858_v5 = vpack.c.bf16 %v848_v53, %v854_v2  ;;  %v837_v7 = vsel %vm598_vm9, %v836_v57, 0.0  ;;  %v843_v8 = vpack.c.bf16 %v833_v52, %v839_v0  ;;  %v1154_v53 = vsel %vm326_vm6, %v1071_v15, 0  ;;  %v1205_v57 = vld [vmem:[#allocation2 + $0x34] sm:$0xf]  ;;  %v1913_v2 = vld [vmem:[#allocation2 + $0x40] sm:$0xff]  }
 0x30c   :  { %1782 = vmatprep.mubr.msk.bf16.mxu0 %vm319_vm7, %v857_v3  ;;  %v842_v9 = vpack.c.bf16 %v835_v4, %v837_v7  ;;  %v1215_v60 = vsel %vm326_vm6, %v1205_v57, 0  ;;  %v1490_v63 = vsel %vm326_vm6, %v1470_v62, 0  ;;  %v1649_v3 = vld [vmem:[%s2287_s2 + $0x5] ss:$0 sm:$0xff] }
 0x30d   :  { %1783 = vmatmul.mubr.msk.bf16.vlgmr.msra.gmra.mrb[8].mxu0 %vm319_vm7, %v858_v5 }
 0x30e   :  { %1787 = vmatpush3.bf16.msra.mxu0 %v924_v6  ;;  %1788 = vmatprep.mubr.msk.bf16.mxu0 %vm319_vm7, %v842_v9 }
 0x30f   :  { %1898 = vmatprep.subr.msk.bf16.mxu0 %vm326_vm6, %v975_v10 }
 0x319   :  { %1789 = vmatmul.mubr.msk.bf16.vlgmr.msra.gmra.mrb[8].mxu0 %vm319_vm7, %v843_v8 }
 0x31a   :  { %1793 = vmatpush3.bf16.msra.mxu0 %v985_v11  ;;  %1794 = vmatprep.mubr.msk.bf16.mxu0 %vm319_vm7, %v976_v51 }
 0x31b   :  { %1816 = vmatprep.subr.bf16.mxu0 %v1968_v12 }
 0x325   :  { %1795 = vmatmul.mubr.msk.bf16.vlgmr.msra.gmra.mrb[8].mxu0 %vm319_vm7, %v977_v48 }
 0x326   :  { %1818 = vmatprep.mubr.msk.bf16.mxu0 %vm1969_vm10, %v1968_v12  ;;  %1817 = vmatpush3.bf16.msra.mxu0 %v1913_v2 }
 0x327   :  { %1822 = vmatprep.subr.bf16.mxu0 %v1968_v12 }
 0x3f8   :  { %v1796_v17 = vpop.f32.mrb[8].mxu0 }
 0x3f9   :  { %v1047_v18 = vadd.f32 %v1796_v17, %v1642_v16  ;;  %v1021_v19 = vpop.f32.mrb[9].mxu0 }
 0x3fa   :  { %v1045_v20 = vadd.f32 %v1642_v16, %v1021_v19  ;;  %v1797_v21 = vpop.f32.mrb[10].mxu0 }
 0x3fb   :  { %v1051_v22 = vmax.f32 %v1047_v18, 0.0  ;;  %v1048_v23 = vadd.f32 %v1797_v21, %v1642_v16  ;;  %v1024_v24 = vpop.f32.mrb[11].mxu0 }
 0x3fc   :  { %v1049_v25 = vmax.f32 %v1045_v20, 0.0  ;;  %v1046_v26 = vadd.f32 %v1642_v16, %v1024_v24 }
 0x3fd   :  { %v1055_v27 = vadd.f32 %v1051_v22, %v2109_v55  ;;  %v1052_v28 = vmax.f32 %v1048_v23, 0.0 }
 0x3fe   :  { %v1053_v29 = vadd.f32 %v1049_v25, %v2111_v56  ;;  %v1050_v30 = vmax.f32 %v1046_v26, 0.0 }
 0x3ff   :  { %v1059_v31 = vmax.f32 %v1055_v27, 0.0  ;;  %v1056_v32 = vadd.f32 %v1052_v28, %v2113_v58 }
 0x400   :  { %v1057_v33 = vmax.f32 %v1053_v29, 0.0  ;;  %v1054_v34 = vadd.f32 %v1050_v30, %v2118_v61 }
 0x401   :  { %v1060_v35 = vmax.f32 %v1056_v32, 0.0  ;;  %v1076_v38 = vrot.slane %v1059_v31, 4  ;;  %v1073_v1 = vpack.c.bf16 %v1059_v31, %v1968_v12 }
 0x402   :  { %v1074_v36 = vrot.slane %v1057_v33, 4  ;;  %v1058_v37 = vmax.f32 %v1054_v34, 0.0  ;;  %v1072_v54 = vpack.c.bf16 %v1057_v33, %v1968_v12 }
 0x403   :  { %v1077_v39 = vrot.slane %v1060_v35, 4  ;;  %v1207_v40 = vpack.c.bf16 %v1060_v35, %v1059_v31  ;;  %v1472_v41 = vpack.c.bf16 %v1060_v35, %v1060_v35 }
 0x404   :  { %v1075_v42 = vrot.slane %v1058_v37, 4  ;;  %v1471_v43 = vpack.c.bf16 %v1058_v37, %v1058_v37  ;;  %v1206_v55 = vpack.c.bf16 %v1058_v37, %v1057_v33 }
 0x405   :  { %v1078_v56 = vsel %vm604_vm8, %v1076_v38, %v1077_v39  ;;  %v1481_v44 = vunpack.c.l.b16 %v1472_v41  ;;  %v1081_v58 = vsel %vm604_vm8, %v1077_v39, %v1074_v36 }
 0x406   :  { %v1079_v61 = vsel %vm604_vm8, %v1075_v42, %v1076_v38  ;;  %v1480_v45 = vunpack.c.l.b16 %v1471_v43  ;;  %v1080_v46 = vsel %vm604_vm8, %v1074_v36, %v1075_v42  ;;  %v1082_v47 = vsel %vm598_vm9, %v1081_v58, 0.0  ;;  %v1914_v38 = vld [vmem:[#allocation2 + $0x38] sm:$0xff]  }
 0x407   :  { %v1483_v48 = vrot.slane %v1481_v44, 6  ;;  %v1087_v49 = vpack.c.bf16 %v1080_v46, %v1082_v47  ;;  %v1084_v50 = vsel %vm598_vm9, %v1079_v61, 0.0  ;;  %v1916_v43 = vld [vmem:[#allocation2 + $0x54] sm:$0xff]  }
 0x408   :  { %v1482_v51 = vrot.slane %v1480_v45, 7  ;;  %v1088_v52 = vpack.c.bf16 %v1078_v56, %v1084_v50  ;;  %v1656_v50 = vld [vmem:[%s2287_s2 + $0x6] ss:$0 sm:$0xff] }
 0x409   :  { %1800 = vmatprep.mubr.msk.bf16.mxu1 %vm319_vm7, %v1087_v49 }
 0x40a   :  { %1801 = vmatmul.mubr.msk.bf16.vlgmr.msra.gmra.mrb[8].mxu1 %vm319_vm7, %v1088_v52  ;;  %v1484_v59 = vsel %vm1297_vm11, %v1483_v48, %v1482_v51 }
 0x40b   :  { %1805 = vmatpush3.bf16.msra.mxu1 %v1154_v53  ;;  %1806 = vmatprep.mubr.msk.bf16.mxu1 %vm319_vm7, %v1072_v54  ;;  %v1485_v0 = vpack.c.b16 %v1484_v59, %v1484_v59 }
 0x40c   :  { %1901 = vmatprep.subr.msk.bf16.mxu1 %vm326_vm6, %v1205_v57 }
 0x416   :  { %1807 = vmatmul.mubr.msk.bf16.vlgmr.msra.gmra.mrb[8].mxu1 %vm319_vm7, %v1073_v1 }
 0x417   :  { %1811 = vmatpush3.bf16.msra.mxu1 %v1215_v60  ;;  %1812 = vmatprep.mubr.msk.bf16.mxu1 %vm319_vm7, %v1206_v55 }
 0x418   :  { %1834 = vmatprep.subr.bf16.mxu1 %v1968_v12 }
 0x422   :  { %1813 = vmatmul.mubr.msk.bf16.vlgmr.msra.gmra.mrb[8].mxu1 %vm319_vm7, %v1207_v40  ;;  %v1915_v40 = vld [vmem:[#allocation2 + $0x48] sm:$0xff]  }
 0x423   :  { %1835 = vmatpush3.bf16.msra.mxu1 %v1490_v63  ;;  %1836 = vmatprep.mubr.msk.bf16.mxu1 %vm1969_vm10, %v1968_v12 }
 0x42a   :  { %1837 = vmatmul.mubr.msk.bf16.vlgmr.msra.gmra.mrb[12].mxu1 %vm319_vm7, %v1485_v0  ;;  %v1659_v0 = vld [vmem:[%s2287_s2 + $0x8] ss:$0 sm:$0xff] }
 0x4f5   :  { %v1814_v4 = vpop.f32.mrb[8].mxu1 }
 0x4f6   :  { %v1277_v5 = vadd.f32 %v1814_v4, %v1649_v3  ;;  %v1251_v6 = vpop.f32.mrb[9].mxu1 }
 0x4f7   :  { %v1275_v7 = vadd.f32 %v1649_v3, %v1251_v6  ;;  %v1815_v8 = vpop.f32.mrb[10].mxu1 }
 0x4f8   :  { %v1281_v9 = vmax.f32 %v1277_v5, 0.0  ;;  %v1278_v10 = vadd.f32 %v1815_v8, %v1649_v3  ;;  %v1254_v11 = vpop.f32.mrb[11].mxu1 }
 0x4f9   :  { %v1279_v13 = vmax.f32 %v1275_v7, 0.0  ;;  %v1276_v14 = vadd.f32 %v1649_v3, %v1254_v11 }
 0x4fa   :  { %v1286_v15 = vpack.c.bf16 %v1281_v9, %v1281_v9  ;;  %v1282_v16 = vmax.f32 %v1278_v10, 0.0 }
 0x4fb   :  { %v1285_v17 = vpack.c.bf16 %v1279_v13, %v1279_v13  ;;  %v1280_v18 = vmax.f32 %v1276_v14, 0.0 }
 0x4fc   :  { %v1353_v19 = vunpack.c.l.b16 %v1286_v15  ;;  %v1290_v20 = vpack.c.bf16 %v1282_v16, %v1282_v16 }
 0x4fd   :  { %v1352_v21 = vunpack.c.l.b16 %v1285_v17  ;;  %v1289_v22 = vpack.c.bf16 %v1280_v18, %v1280_v18  ;;  %v1526_v23 = vpop.f32.mrb[12].mxu1 }
 0x4fe   :  { %v1355_v24 = vrot.slane %v1353_v19, 6  ;;  %v1294_v25 = vunpack.c.l.b16 %v1290_v20  ;;  %v1838_v26 = vpop.f32.mrb[13].mxu1 }
 0x4ff   :  { %v1354_v27 = vrot.slane %v1352_v21, 7  ;;  %v1293_v28 = vunpack.c.l.b16 %v1289_v22  ;;  %v1529_v29 = vpop.f32.mrb[14].mxu1 }
 0x500   :  { %v1296_v30 = vrot.slane %v1294_v25, 2  ;;  %v1410_v31 = vrot.slane %v1294_v25, 6  ;;  %v1839_v32 = vpop.f32.mrb[15].mxu1 }
 0x501   :  { %v1356_v33 = vsel %vm1297_vm11, %v1355_v24, %v1354_v27  ;;  %v1295_v34 = vrot.slane %v1293_v28, 3  ;;  %v1409_v35 = vrot.slane %v1293_v28, 7 }
 0x502   :  { %v1357_v41 = vpack.c.b16 %v1356_v33, %v1356_v33 }
 0x503   :  { %v1298_v36 = vsel %vm1297_vm11, %v1296_v30, %v1295_v34  ;;  %v1411_v37 = vsel %vm1297_vm11, %v1410_v31, %v1409_v35 }
 0x504   :  { %v1299_v39 = vpack.c.b16 %v1298_v36, %v1298_v36  ;;  %v1412_v42 = vpack.c.b16 %v1411_v37, %v1411_v37 }
 0x506   :  { %1819 = vmatmul.mubr.msk.bf16.vlgmr.msra.gmra.mrb[12].mxu0 %vm1306_vm12, %v1299_v39 }
 0x507   :  { %1823 = vmatpush3.bf16.msra.mxu0 %v1914_v38  ;;  %1824 = vmatprep.mubr.msk.bf16.mxu0 %vm1969_vm10, %v1968_v12 }
 0x508   :  { %1828 = vmatprep.subr.bf16.mxu0 %v1968_v12 }
 0x50e   :  { %1825 = vmatmul.mubr.msk.bf16.vlgmr.msra.gmra.mrb[16].mxu0 %vm1306_vm12, %v1357_v41 }
 0x50f   :  { %1829 = vmatpush3.bf16.msra.mxu0 %v1915_v40  ;;  %1830 = vmatprep.mubr.msk.bf16.mxu0 %vm1969_vm10, %v1968_v12 }
 0x510   :  { %1840 = vmatprep.subr.bf16.mxu0 %v1968_v12 }
 0x516   :  { %1831 = vmatmul.mubr.msk.bf16.vlgmr.msra.gmra.mrb[20].mxu0 %vm1306_vm12, %v1412_v42 }
 0x517   :  { %1842 = vmatprep.mubr.msk.bf16.mxu0 %vm1969_vm10, %v1968_v12  ;;  %1841 = vmatpush3.bf16.msra.mxu0 %v1916_v43  ;;  %v1657_v12 = vld [vmem:[%s2287_s2 + $0x7] ss:$0 sm:$0xff] }
 0x518   :  { %v1527_v59 = vadd.f32 %v1657_v12, %v1526_v23 }
 0x5d9   :  { %v1344_v55 = vpop.f32.mrb[12].mxu0 }
 0x5da   :  { %v1820_v56 = vpop.f32.mrb[13].mxu0 }
 0x5db   :  { %v1347_v44 = vpop.f32.mrb[14].mxu0 }
 0x5dc   :  { %v1821_v58 = vpop.f32.mrb[15].mxu0 }
 0x5e1   :  { %v1401_v61 = vpop.f32.mrb[16].mxu0 }
 0x5e2   :  { %v1402_v45 = vadd.f32 %v1401_v61, %v1344_v55  ;;  %v1826_v46 = vpop.f32.mrb[17].mxu0 }
 0x5e3   :  { %v1404_v47 = vpop.f32.mrb[18].mxu0 }
 0x5e4   :  { %v1827_v48 = vpop.f32.mrb[19].mxu0 }
 0x5e9   :  { %v1456_v49 = vpop.f32.mrb[20].mxu0 }
 0x5ea   :  { %v1462_v51 = vadd.f32 %v1456_v49, %v1402_v45  ;;  %v1832_v52 = vpop.f32.mrb[21].mxu0 }
 0x5eb   :  { %v1459_v53 = vpop.f32.mrb[22].mxu0 }
 0x5ec   :  { %v1468_v54 = vadd.f32 %v1656_v50, %v1462_v51  ;;  %v1833_v57 = vpop.f32.mrb[23].mxu0 }
 0x5ee   :  { %v1469_v1 = vmax.f32 %v1468_v54, 0.0 }
 0x5f0   :  { %v1532_v60 = vadd.f32 %v1527_v59, %v1469_v1 }
 0x5f2   :  { %v1533_v62 = vmax.f32 %v1532_v60, 0.0 }
 0x5f4   :  { %v1537_v63 = vpack.c.bf16 %v1533_v62, %v1533_v62 }
 0x5f6   :  { %1843 = vmatmul.mubr.msk.bf16.vlgmr.msra.gmra.mrb[24].mxu0 %vm1306_vm12, %v1537_v63 }
 0x6c9   :  { %v1585_v2 = vpop.f32.mrb[24].mxu0 }
 0x6ca   :  { %v1586_v3 = vadd.f32 %v1659_v0, %v1585_v2  ;;  %v1844_v4 = vpop.f32.mrb[25].mxu0 }
 0x6cb   :  { %v1588_v5 = vpop.f32.mrb[26].mxu0 }
 0x6cc   :  { %1591 = vst [vmem:[#allocation5] sm:$0x3] %v1586_v3  ;;  %v1845_v6 = vpop.f32.mrb[27].mxu0 }
 0x6cd   :  { %1950 = shalt.err (!%p1947_p12)
}
 0x6ce   :  { %s1951_s2 = scalar_lea.hbm %s2288_s3, 32 }
 0x6cf   :  { %p1952_p13 = scmp.ne.s32.totalorder %s2288_s3, %s1951_s2  ;;  %p1955_p0 = scmp.lt.u32.totalorder %s1951_s2, %s2288_s3 }
 0x6d1   :  { %p1957_p1 = pnand %p1955_p0, %p1952_p13 }
 0x6d3   :  { %1960 = shalt.err (!%p1957_p1)
}
 0x6d4   :  { %1601 = dma.vmem_to_hbm [thread:$0]  %s1599_s24, 32, %s2288_s3, [#allocation4]  }
 0x6d5   :  { %1963 = dma.done.wait [#allocation4], 32  }
 0x6d6   :  { %1964 = vsyncadd [#allocation4], 4294967264 }
 0x6d7   :  { %1605 = vsyncpa [#allocation3], 1 }
 0x6d8   :  { %1606 = vsyncpa [#allocation4], 1 }

</bundles_post_ra>
